<compile_context>
chip_gen: v6e
topology: v6e:2x2x1
jax: 0.10.0
libtpu: 0.0.40
codegen_flags: <defaults>
</compile_context>

<pallas_src>
import jax
import jax.numpy as jnp
from jax.experimental import pallas as pl
from jax.experimental.pallas import tpu as pltpu

LANES = 128              # TPU lane dim (fast axis)
SUBLANES = 8             # TPU sublane dim
_MAX_DMA_CHUNKS = 8      # a few concurrent DMAs are enough to saturate HBM


def _row_chunks(rows, max_chunks=_MAX_DMA_CHUNKS):
    """Split `rows` into <= max_chunks contiguous, sublane-aligned chunks."""
    per = -(-rows // max_chunks)                           # ceil
    per = max(SUBLANES, -(-per // SUBLANES) * SUBLANES)    # >=8, multiple of 8
    chunks, start = [], 0
    while start < rows:
        size = min(per, rows - start)
        chunks.append((start, size))
        start += size
    return tuple(chunks)


def _make_hbm_copy_kernel(chunks):
    """Kernel body: N concurrent HBM->HBM DMAs, no VMEM staging, no grid."""
    def kernel(x_hbm, o_hbm, sems):
        copies = []
        for idx, (start, size) in enumerate(chunks):       # static unroll
            cp = pltpu.make_async_copy(
                x_hbm.at[pl.ds(start, size), :],
                o_hbm.at[pl.ds(start, size), :],
                sems.at[idx],
            )
            cp.start()
            copies.append(cp)
        for cp in copies:
            cp.wait()
    return kernel


@jax.jit
def _pallas_flat_copy(flat):
    """Materialize a fresh contiguous copy of a 1-D array (len % 128 == 0)."""
    n = flat.shape[0]
    itemsize = jnp.dtype(flat.dtype).itemsize
    rows = n // LANES
    x2d = flat.reshape(rows, LANES)                        # lane-dense layout
    chunks = _row_chunks(rows)

    out2d = pl.pallas_call(
        _make_hbm_copy_kernel(chunks),
        out_shape=jax.ShapeDtypeStruct((rows, LANES), flat.dtype),
        in_specs=[pl.BlockSpec(memory_space=pl.ANY)],      # stay in HBM
        out_specs=pl.BlockSpec(memory_space=pl.ANY),       # stay in HBM
        scratch_shapes=[pltpu.SemaphoreType.DMA((len(chunks),))],
        cost_estimate=pl.CostEstimate(
            flops=0, transcendentals=0, bytes_accessed=2 * n * itemsize),
    )(x2d)
    return out2d.reshape(n)


def _resolve_shape(shape, total):
    """Resolve a single -1 entry like torch.Tensor.view does."""
    shape = tuple(int(s) for s in shape)
    if -1 in shape:
        idx = shape.index(-1)
        known = 1
        for j, s in enumerate(shape):
            if j != idx:
                known *= s
        assert known != 0 and total % known == 0, \
            "view shape incompatible with input size"
        shape = shape[:idx] + (total // known,) + shape[idx + 1:]
    prod = 1
    for s in shape:
        prod *= s
    assert prod == total, "view shape incompatible with input size"
    return shape


class Reshape:
    """JAX/Pallas equivalent of the PyTorch Reshape(nn.Module)."""

    def __init__(self, *args):
        self.shape = args

    def __call__(self, x, materialize=False):
        total = x.size
        target = _resolve_shape(self.shape, total)
        if materialize and total > 0 and total % LANES == 0:
            # Physical copy into a fresh contiguous buffer via HBM->HBM DMA.
            flat = _pallas_flat_copy(x.reshape(total))
            return flat.reshape(target)
        # Default (== torch .view): metadata-only reshape, zero HBM traffic.
        # Misaligned sizes also take this path; padding would only add traffic.
        return x.reshape(target)


if __name__ == "__main__":
    key = jax.random.PRNGKey(0)
    # NCHW input, as a PyTorch conv pipeline would produce.
    x = jax.random.normal(key, (2, 4, 16, 16), dtype=jnp.float32)
    ref = x.reshape(2, 4, 256)

    mod = Reshape(2, 4, -1)

    # Default path: metadata-only view (matches torch .view exactly).
    y = jax.block_until_ready(mod(x))
    assert y.shape == (2, 4, 256) and y.dtype == x.dtype
    assert bool(jnp.all(y == ref))

    # Kernel path: materialized copy through the Pallas HBM->HBM DMA kernel.
    y_copy = jax.block_until_ready(mod(x, materialize=True))
    assert y_copy.shape == (2, 4, 256) and y_copy.dtype == x.dtype
    assert bool(jnp.all(y_copy == ref))

    print("KERNEL_OK")
</pallas_src>

<mosaic_0001>
module attributes {stable_mosaic.version = 11 : i64} {
  func.func @kernel(%arg0: memref<16x128xf32, #tpu.memory_space<any>>, %arg1: memref<16x128xf32, #tpu.memory_space<any>>, %arg2: memref<2x!tpu.dma_semaphore, #tpu.memory_space<semaphore_mem>>) attributes {dimension_semantics = [], scalar_prefetch = 0 : i64, scratch_operands = 1 : i64, tpu.core_type = #tpu.core_type<tc>} {
    %c0_i32 = arith.constant 0 : i32
    %c0_i32_0 = arith.constant 0 : i32
    %c0_i32_1 = arith.constant 0 : i32
    %0 = tpu.memref_slice %arg0[%c0_i32_0, %c0_i32_1] : memref<16x128xf32, #tpu.memory_space<any>> -> memref<8x128xf32, #tpu.memory_space<any>>
    %c0_i32_2 = arith.constant 0 : i32
    %c0_i32_3 = arith.constant 0 : i32
    %1 = tpu.memref_slice %arg1[%c0_i32_2, %c0_i32_3] : memref<16x128xf32, #tpu.memory_space<any>> -> memref<8x128xf32, #tpu.memory_space<any>>
    %2 = tpu.memref_slice %arg2[%c0_i32] : memref<2x!tpu.dma_semaphore, #tpu.memory_space<semaphore_mem>> -> memref<1x!tpu.dma_semaphore, #tpu.memory_space<semaphore_mem>>
    %3 = tpu.memref_squeeze %2 : memref<1x!tpu.dma_semaphore, #tpu.memory_space<semaphore_mem>> -> memref<!tpu.dma_semaphore, #tpu.memory_space<semaphore_mem>>
    tpu.enqueue_dma source(%0 : memref<8x128xf32, #tpu.memory_space<any>>) target(%1 : memref<8x128xf32, #tpu.memory_space<any>>) target_semaphore(%3 : memref<!tpu.dma_semaphore, #tpu.memory_space<semaphore_mem>>)
    %c1_i32 = arith.constant 1 : i32
    %c8_i32 = arith.constant 8 : i32
    %c0_i32_4 = arith.constant 0 : i32
    %4 = tpu.memref_slice %arg0[%c8_i32, %c0_i32_4] : memref<16x128xf32, #tpu.memory_space<any>> -> memref<8x128xf32, #tpu.memory_space<any>>
    %c8_i32_5 = arith.constant 8 : i32
    %c0_i32_6 = arith.constant 0 : i32
    %5 = tpu.memref_slice %arg1[%c8_i32_5, %c0_i32_6] : memref<16x128xf32, #tpu.memory_space<any>> -> memref<8x128xf32, #tpu.memory_space<any>>
    %6 = tpu.memref_slice %arg2[%c1_i32] : memref<2x!tpu.dma_semaphore, #tpu.memory_space<semaphore_mem>> -> memref<1x!tpu.dma_semaphore, #tpu.memory_space<semaphore_mem>>
    %7 = tpu.memref_squeeze %6 : memref<1x!tpu.dma_semaphore, #tpu.memory_space<semaphore_mem>> -> memref<!tpu.dma_semaphore, #tpu.memory_space<semaphore_mem>>
    tpu.enqueue_dma source(%4 : memref<8x128xf32, #tpu.memory_space<any>>) target(%5 : memref<8x128xf32, #tpu.memory_space<any>>) target_semaphore(%7 : memref<!tpu.dma_semaphore, #tpu.memory_space<semaphore_mem>>)
    %c0_i32_7 = arith.constant 0 : i32
    %c0_i32_8 = arith.constant 0 : i32
    %c0_i32_9 = arith.constant 0 : i32
    %8 = tpu.memref_slice %arg0[%c0_i32_8, %c0_i32_9] : memref<16x128xf32, #tpu.memory_space<any>> -> memref<8x128xf32, #tpu.memory_space<any>>
    %c0_i32_10 = arith.constant 0 : i32
    %c0_i32_11 = arith.constant 0 : i32
    %9 = tpu.memref_slice %arg1[%c0_i32_10, %c0_i32_11] : memref<16x128xf32, #tpu.memory_space<any>> -> memref<8x128xf32, #tpu.memory_space<any>>
    %10 = tpu.memref_slice %arg2[%c0_i32_7] : memref<2x!tpu.dma_semaphore, #tpu.memory_space<semaphore_mem>> -> memref<1x!tpu.dma_semaphore, #tpu.memory_space<semaphore_mem>>
    %11 = tpu.memref_squeeze %10 : memref<1x!tpu.dma_semaphore, #tpu.memory_space<semaphore_mem>> -> memref<!tpu.dma_semaphore, #tpu.memory_space<semaphore_mem>>
    tpu.wait_dma2 semaphore(%11 : memref<!tpu.dma_semaphore, #tpu.memory_space<semaphore_mem>>) src(%8 : memref<8x128xf32, #tpu.memory_space<any>>) dst(%9 : memref<8x128xf32, #tpu.memory_space<any>>)
    %c1_i32_12 = arith.constant 1 : i32
    %c8_i32_13 = arith.constant 8 : i32
    %c0_i32_14 = arith.constant 0 : i32
    %12 = tpu.memref_slice %arg0[%c8_i32_13, %c0_i32_14] : memref<16x128xf32, #tpu.memory_space<any>> -> memref<8x128xf32, #tpu.memory_space<any>>
    %c8_i32_15 = arith.constant 8 : i32
    %c0_i32_16 = arith.constant 0 : i32
    %13 = tpu.memref_slice %arg1[%c8_i32_15, %c0_i32_16] : memref<16x128xf32, #tpu.memory_space<any>> -> memref<8x128xf32, #tpu.memory_space<any>>
    %14 = tpu.memref_slice %arg2[%c1_i32_12] : memref<2x!tpu.dma_semaphore, #tpu.memory_space<semaphore_mem>> -> memref<1x!tpu.dma_semaphore, #tpu.memory_space<semaphore_mem>>
    %15 = tpu.memref_squeeze %14 : memref<1x!tpu.dma_semaphore, #tpu.memory_space<semaphore_mem>> -> memref<!tpu.dma_semaphore, #tpu.memory_space<semaphore_mem>>
    tpu.wait_dma2 semaphore(%15 : memref<!tpu.dma_semaphore, #tpu.memory_space<semaphore_mem>>) src(%12 : memref<8x128xf32, #tpu.memory_space<any>>) dst(%13 : memref<8x128xf32, #tpu.memory_space<any>>)
    return
  }
}

</mosaic_0001>

<bundles_post_ra>
// kernel: _pallas_flat_copy.1
= control target key start
LH: loop header
LB: loop body
LE: loop exit
PB: predicated region body
PF: predicated region fallthrough
CT: control target
= control target key end

     0   :  { %s51_s9 = smov [#allocation2]   ;;  %s52_s10 = smov 131072   ;;  %s77_s0 = inlined_call_operand.hbm [shape: f32[16,128], index: 0, kind: input, shape index: {}]   ;;  %s78_s1 = inlined_call_operand.hbm [shape: f32[16,128], index: 1, kind: output, shape index: {}]  }
   0x1   :  { %s13_s8 = scalar_lea.hbm %s77_s0, 128  ;;  %s53_s11 = smov 0  }
   0x2   :  { %12 = dma.general %s77_s0, 128, %s78_s1, %s51_s9, %s52_s10, [#allocation4], %s53_s11, 0  }
   0x3   :  { %s14_s18 = scalar_lea.hbm %s78_s1, 128  ;;  %s54_s19 = smov [#allocation2 + $0x1]  }
   0x4   :  { %22 = dma.general %s13_s8, 128, %s14_s18, %s54_s19, %s52_s10, [#allocation6], %s53_s11, 0  }
   0x5   :  { %47 = dma.done.wait [#allocation2], 128 }
   0x6   :  { %48 = vsyncadd [#allocation2], 4294967168 }
   0x7   :  { %49 = dma.done.wait [#allocation2 + $0x1], 128 }
   0x8   :  { %50 = vsyncadd [#allocation2 + $0x1], 4294967168 }
   0x9   :  { %28 = vsyncmov [#allocation2] }
   0xc   :  { %s29_s20 = vpop.sfrf %28 }
   0xd   :  { %p41_p0 = scmp.ne.s32.totalorder %s29_s20, 0 }
   0xf   :  { %33 = shalt.err (%p41_p0)  }
  0x10   :  { %35 = vsyncmov [#allocation2 + $0x1] }
  0x13   :  { %s36_s21 = vpop.sfrf %35 }
  0x14   :  { %p42_p1 = scmp.ne.s32.totalorder %s36_s21, 0 }
  0x16   :  { %40 = shalt.err (%p42_p1)  }

</bundles_post_ra>
